<compile_context>
chip_gen: v7x
topology: tpu7x:2x2x1
jax: 0.10.0
libtpu: 0.0.40
codegen_flags: <defaults>
</compile_context>

<pallas_src>
import functools

import jax
import jax.numpy as jnp
from jax.experimental import pallas as pl
from jax.experimental.pallas import tpu as pltpu

_MIB = 1024 * 1024


def _fermi_dirac_kernel(dist_ref, out_ref, *, r, half_inv_t):
    d = dist_ref[...].astype(jnp.float32)
    # 1/(exp((d-r)/t)+1) == sigmoid((r-d)/t) == 0.5*tanh((r-d)/(2t)) + 0.5
    p = 0.5 * jnp.tanh((r - d) * half_inv_t) + 0.5
    out_ref[...] = p.astype(out_ref.dtype)


def _tpu_vmem_capacity_bytes():
    try:
        return int(pltpu.get_tpu_info().vmem_capacity_bytes)
    except Exception:
        return None


def _tile_budget_bytes(vmem_cap):
    if vmem_cap is None:
        return 2 * _MIB                    # safe everywhere
    if vmem_cap <= 80 * _MIB:              # v7x-class: 64 MiB VMEM per TC
        return 5 * _MIB                    # 4 x 5 = 20 MiB < 32 MiB default scoped
    return 3 * _MIB                        # v5e/v6e (128 MiB): 4 x 3 = 12 MiB < 16 MiB


def _choose_blocks(R, C, itemsize, row_mult, target_bytes):
    """Pick (block_rows, block_cols) honoring the (sublane, 128) rule.

    C is assumed to be either a multiple of 128 or small enough that a
    row_mult-row full-width strip fits the byte budget (the wrapper pads
    otherwise), so no oversized tiles are produced here.
    """
    full_strip = row_mult * C * itemsize
    if C % 128 == 0 and full_strip > target_bytes:
        bc = (target_bytes // (row_mult * itemsize)) // 128 * 128
        bc = int(min(max(128, bc), C))
    else:
        bc = C                             # full extent: always legal, lane-dense
    rows_fit = (target_bytes // max(1, bc * itemsize)) // row_mult * row_mult
    rows_fit = int(max(row_mult, rows_fit))
    br = R if rows_fit >= R else rows_fit
    return br, bc


def fermi_dirac_decoder(dist, r: float, t: float, *,
                        block_rows=None, block_cols=None,
                        vmem_limit_bytes=None, allow_input_fusion=None):
    """Elementwise Fermi-Dirac decoder: 1 / (exp((dist - r)/t) + 1)."""
    assert dist.ndim == 2, "expected 2-D distance matrix [rows, cols]"
    R, C = dist.shape
    itemsize = jnp.dtype(dist.dtype).itemsize
    row_mult = max(8, 32 // max(1, itemsize))    # 8 f32 / 16 bf16 / 32 int8

    vmem_cap = _tpu_vmem_capacity_bytes()
    target = _tile_budget_bytes(vmem_cap)

    # Wide, non-lane-multiple widths: pad to the next multiple of 128 so the
    # column axis stays tileable instead of forcing one huge full-width tile.
    pad_c = 0
    if C % 128 != 0 and row_mult * C * itemsize > target:
        pad_c = (-C) % 128
    x = jnp.pad(dist, ((0, 0), (0, pad_c))) if pad_c else dist
    Ce = C + pad_c

    br, bc = _choose_blocks(R, Ce, itemsize, row_mult, target)

    # Guarantee >= 2 blocks so both v7x TensorCores get work when the whole
    # array would otherwise collapse to a single (1, 1) grid step.
    if br == R and bc == Ce and R >= 2 * row_mult:
        half = ((R + 1) // 2 + row_mult - 1) // row_mult * row_mult
        if half < R:
            br = half

    # Optional user overrides, sanitized against the (sublane, 128) rule.
    if block_rows is not None:
        br = min(int(block_rows), R)
        if br != R and br % row_mult != 0:
            br = min(R, ((br + row_mult - 1) // row_mult) * row_mult)
    if block_cols is not None:
        bc = min(int(block_cols), Ce)
        if bc != Ce and bc % 128 != 0:
            bc = min(Ce, ((bc + 127) // 128) * 128)

    grid = (pl.cdiv(R, br), pl.cdiv(Ce, bc))

    # Only raise the scoped-VMEM limit when the chosen tiles actually need it,
    # and never request more than half of the chip's physical VMEM.
    est_vmem = 2 * 2 * br * bc * itemsize        # 2 arrays x 2 pipeline buffers
    default_scoped = 16 * _MIB if (vmem_cap is None or vmem_cap > 80 * _MIB) \
        else 32 * _MIB
    if vmem_limit_bytes is None and est_vmem > default_scoped:
        cap = (vmem_cap // 2) if vmem_cap is not None else 32 * _MIB
        vmem_limit_bytes = min(cap, max(default_scoped, 2 * est_vmem))

    compiler_kwargs = dict(dimension_semantics=("parallel", "parallel"))
    if vmem_limit_bytes is not None:
        compiler_kwargs["vmem_limit_bytes"] = int(vmem_limit_bytes)
    if allow_input_fusion is not None:
        # e.g. [0] lets XLA fuse the upstream pairwise-distance producer into
        # the read of `dist` (the biggest end-to-end win for this roofline op).
        compiler_kwargs["allow_input_fusion"] = list(allow_input_fusion)

    kernel = functools.partial(_fermi_dirac_kernel,
                               r=float(r), half_inv_t=0.5 / float(t))

    out = pl.pallas_call(
        kernel,
        out_shape=jax.ShapeDtypeStruct((R, Ce), dist.dtype),
        grid_spec=pl.GridSpec(
            grid=grid,
            in_specs=[pl.BlockSpec((br, bc), lambda i, j: (i, j))],
            out_specs=pl.BlockSpec((br, bc), lambda i, j: (i, j)),
        ),
        compiler_params=pltpu.CompilerParams(**compiler_kwargs),
        cost_estimate=pl.CostEstimate(
            flops=4 * R * Ce,
            transcendentals=R * Ce,
            bytes_accessed=2 * R * Ce * itemsize),
    )(x)
    return out[:, :C] if pad_c else out


def fermi_dirac_ref(dist, r, t):
    return 1.0 / (jnp.exp((dist - r) / t) + 1.0)


if __name__ == "__main__":
    r, t = 2.0, 1.0  # FermiDiracDecoder hyperparameters

    key = jax.random.PRNGKey(0)
    k1, k2, k3 = jax.random.split(key, 3)

    # Small pairwise-distance blocks consistent with the module's usage.
    cases = [
        # lane-aligned width
        jax.random.uniform(k1, (16, 256), jnp.float32, 0.0, 5.0),
        # non-128-multiple width -> full-extent column block path
        jax.random.uniform(k2, (24, 200), jnp.float32, 0.0, 5.0),
        # whole array fits one tile -> exercises the 2-row-block split
        jax.random.uniform(k3, (64, 384), jnp.float32, 0.0, 5.0),
    ]
    for dist in cases:
        out = jax.block_until_ready(fermi_dirac_decoder(dist, r, t))
        ref = fermi_dirac_ref(dist, r, t)
        assert out.shape == dist.shape and out.dtype == dist.dtype
        assert jnp.allclose(out, ref, atol=1e-5, rtol=1e-5), "mismatch vs reference"

    print("KERNEL_OK")
</pallas_src>

<mosaic_0001>
module attributes {stable_mosaic.version = 11 : i64} {
  func.func @_fermi_dirac_kernel(%arg0: i32, %arg1: i32, %arg2: memref<8x256xf32, #tpu.memory_space<vmem>>, %arg3: memref<8x256xf32, #tpu.memory_space<vmem>>) attributes {dimension_semantics = [#tpu.dimension_semantics<parallel>, #tpu.dimension_semantics<parallel>], iteration_bounds = array<i64: 2, 1>, scalar_prefetch = 0 : i64, scratch_operands = 0 : i64, tpu.core_type = #tpu.core_type<tc>, window_params = [{transform_indices = @transform_0, window_bounds = array<i64: 8, 256>}, {transform_indices = @transform_1, window_bounds = array<i64: 8, 256>}]} {
    %c0 = arith.constant 0 : index
    %c0_0 = arith.constant 0 : index
    %0 = vector.load %arg2[%c0, %c0_0] : memref<8x256xf32, #tpu.memory_space<vmem>>, vector<8x256xf32>
    %cst = arith.constant 2.000000e+00 : f32
    %1 = vector.broadcast %cst : f32 to vector<8x256xf32>
    %2 = arith.subf %1, %0 : vector<8x256xf32>
    %cst_1 = arith.constant 5.000000e-01 : f32
    %3 = vector.broadcast %cst_1 : f32 to vector<8x256xf32>
    %4 = arith.mulf %2, %3 : vector<8x256xf32>
    %5 = math.tanh %4 : vector<8x256xf32>
    %cst_2 = arith.constant 5.000000e-01 : f32
    %6 = vector.broadcast %cst_2 : f32 to vector<8x256xf32>
    %7 = arith.mulf %6, %5 : vector<8x256xf32>
    %cst_3 = arith.constant 5.000000e-01 : f32
    %8 = vector.broadcast %cst_3 : f32 to vector<8x256xf32>
    %9 = arith.addf %7, %8 : vector<8x256xf32>
    %c0_4 = arith.constant 0 : index
    %c0_5 = arith.constant 0 : index
    %10 = vector.load %arg3[%c0_4, %c0_5] : memref<8x256xf32, #tpu.memory_space<vmem>>, vector<8x256xf32>
    tpu.vector_store %arg3[%c0_4, %c0_5], %9 {strides = array<i32>} : memref<8x256xf32, #tpu.memory_space<vmem>>, vector<8x256xf32>,
    return
  }
  func.func @transform_0(%arg0: i32, %arg1: i32) -> (i32, i32) {
    %c0_i32 = arith.constant 0 : i32
    return %arg0, %arg1 : i32, i32
  }
  func.func @transform_1(%arg0: i32, %arg1: i32) -> (i32, i32) {
    %c0_i32 = arith.constant 0 : i32
    return %arg0, %arg1 : i32, i32
  }
}

</mosaic_0001>

<bundles_post_ra>
// kernel: tpu_custom_call.1
= control target key start
LH: loop header
LB: loop body
LE: loop exit
PB: predicated region body
PF: predicated region fallthrough
CT: control target
= control target key end

     0   :  { %6 = vsyncpa [#allocation3], 0  ;;  %s649_s0 = inlined_call_operand.hbm [shape: f32[16,256], index: 0, kind: input, shape index: {}]   ;;  %s650_s1 = inlined_call_operand.hbm [shape: f32[16,256], index: 1, kind: output, shape index: {}]  }
   0x1   :  { %8 = vsyncpa [#allocation3 + $0x1], 0 }
   0x2   :  { %9 = vsyncpa [#allocation4], 0 }
   0x3   :  { %11 = vsyncpa [#allocation4 + $0x1], 0  ;;  %s477_s6 = smov 0   ;;  %s479_s7 = smov 0  }
   0x4   :  { %s481_s8 = smov 0   ;;  %s483_s9 = smov 0  }
   0x5   :  { %s485_s10 = smov 0   ;;  %s487_s11 = smov 0  }
   0x6 LB: > { %s268_s12 = sadd.s32 4294967295, %s463_s11   ;;  %s269_s13 = sadd.s32 4294967294, %s463_s11   ;;  %s463_s11 = sphi %s487_s11, %s17_s11   ;;  %s459_s10 = sphi %s485_s10, %s666_s10   ;;  %s455_s9 = sphi %s483_s9, %s665_s9   ;;  %s451_s8 = sphi %s481_s8, %s664_s8   ;;  %s447_s7 = sphi %s479_s7, %s663_s7   ;;  %s443_s6 = sphi %s477_s6, %s662_s6  }
   0x7   : > { %s29_s14 = sadd.s32 1, %s459_s10  ;;  %s38_s15 = sadd.s32 1, %s451_s8 }
   0x8   : > { %p31_p0 = scmp.ge.s32.totalorder %s29_s14, 2  ;;  %p45_p1 = scmp.ne.s32.totalorder %s451_s8, %s447_s7 }
   0x9   : > { %p46_p2 = scmp.eq.s32.totalorder %s463_s11, 0  ;;  %p51_p3 = scmp.ne.s32.totalorder %s447_s7, %s443_s6 }
   0xa   : > { %s668_s14 = smov (%p31_p0, %s29_s14), 0  ;;  %p52_p5 = scmp.eq.s32.totalorder %s268_s12, 0 }
   0xb   : > { %p518_p4 = por %p46_p2, %p45_p1  ;;  %s33_s17 = ssub.s32 %s459_s10, %s668_s14 }
   0xc   : > { %p77_p6 = scmp.eq.s32.totalorder %s268_s12, 1  ;;  %p36_p7 = scmp.eq.s32.totalorder %s33_s17, 0 }
   0xd   : > { %p524_p8 = por %p52_p5, %p51_p3  ;;  %p83_p10 = scmp.eq.s32.totalorder %s269_s13, 1 }
   0xe   : > { %p528_p9 = por %p77_p6, %p45_p1  ;;  %p297_p13 = scmp.lt.s32.totalorder %s463_s11, 2 }
   0xf   : > { %s533_s20 = scalar_select %p36_p7, %s451_s8, %s38_s15  }
  0x10   : > { %s654_s19 = scalar_select %p528_p9, 1, 0 }
  0x11   : > { %p535_p11 = por %p83_p10, %p51_p3  ;;  %s103_s22 = sand.u32 1, %s451_s8  }
  0x12   : > { %s272_s23 = sshll.u32 %s103_s22, 4  ;;  %s283_s24 = sshll.u32 %s459_s10, 8 }
  0x13   : > { %s655_s21 = scalar_select %p535_p11, 1, 0 }
  0x14   : > { %s546_s27 = scalar_lea.hbm %s649_s0, %s283_s24  ;;  %s107_s28 = scalar_lea.vmem [#allocation2], %s272_s23 }
  0x15   : > { %s117_s29 = sshll.u32 %s107_s28, 4  ;;  %p552_p0 = pnand %p297_p13, %p518_p4  ;;  %s548_s29 = int_to_ptr.vmem [resolvable:$true] %s117_s29 }
  0x16   : > { %s104_s2 = scalar_lea.sflag [#allocation3], %s103_s22  ;;  %s351_s3 = scalar_lea.hbm %s546_s27, 256 }
  0x17   : > { %p352_p3 = scmp.ne.s32.totalorder %s546_s27, %s351_s3  ;;  %p353_p5 = pneg %p552_p0 }
  0x18   : > { %s356_s12 = scalar_lea.hbm %s649_s0, 512  ;;  %p357_p4 = scmp.lt.u32.totalorder %s546_s27, %s649_s0 }
  0x19   : > { %p354_p6 = pnand %p353_p5, %p352_p3  ;;  %p358_p10 = scmp.lt.u32.totalorder %s356_s12, %s351_s3 }
  0x1a   : > { %p360_p12 = scmp.lt.u32.totalorder %s351_s3, %s546_s27 }
  0x1b   : > { %p355_p7 = pneg %p354_p6  ;;  %p359_p13 = por %p358_p10, %p357_p4 }
  0x1d   : > { %p361_p1 = por %p360_p12, %p359_p13 }
  0x1f   : > { %p362_p2 = pnand %p361_p1, %p355_p7 }
  0x21   : > { %365 = shalt.err (!%p362_p2)
}
  0x22   : > { %s366_s16 = scalar_lea.vmem %s548_s29, 256  ;;  %s465_s17 = smov [#allocation2]  }
  0x23   : > { %p367_p3 = scmp.ne.s32.totalorder %s548_s29, %s366_s16  ;;  %s371_s22 = sshll.u32 %s465_s17, 4  ;;  %s372_s22 = int_to_ptr.vmem [resolvable:$false] %s371_s22 }
  0x24   : > { %s373_s23 = scalar_lea.vmem %s372_s22, 512  ;;  %p374_p9 = scmp.lt.s32.totalorder %s548_s29, %s372_s22 }
  0x25   : > { %p369_p6 = pnand %p367_p3, %p353_p5  ;;  %p375_p4 = scmp.lt.s32.totalorder %s373_s23, %s366_s16 }
  0x27   : > { %p370_p11 = pneg %p369_p6  ;;  %p376_p10 = por %p375_p4, %p374_p9 }
  0x29   : > { %p377_p12 = pnand %p376_p10, %p370_p11 }
  0x2b   : > { %380 = shalt.err (!%p377_p12)
}
  0x2c   : > { %292 = dma.hbm_to_vmem [thread:$0]  (!%p552_p0), %s546_s27, 256, %s548_s29, %s104_s2  }
  0x2d   : > { %p657_p1 = scmp.lt.s32.totalorder %s463_s11, 3  ;;  %p658_p2 = scmp.ge.s32.totalorder %s463_s11, 1 }
  0x2f   : > { %p123_p5 = pnand %p658_p2, %p657_p1 }
  0x30   : > { %s588_s24 = sand.u32 (!%p123_p5), 1, %s447_s7  }
  0x31   : > { %126 = sbr.rel (%p123_p5) target bundleno = 92 (0x5c), region = 24  ;;  %s276_s25 = sshll.u32 (!%p123_p5), %s588_s24, 4 }
  0x32   : > { %s129_s26 = scalar_lea.sflag (!%p123_p5), [#allocation3], %s588_s24  ;;  %s132_s28 = scalar_lea.vmem (!%p123_p5), [#allocation2], %s276_s25 }
  0x38   : > { %434 = dma.done.wait (%p524_p8), %s129_s26, 256  }
  0x39   : > { %436 = vsyncadd (%p524_p8), %s129_s26, 4294967040  ;;  %v153_v0 = vld [vmem:[%s132_s28] sm:$0xff]  ;;  %v154_v1 = vld [vmem:[%s132_s28 + $0x8] sm:$0xff]  ;;  %s150_s27 = scalar_lea.vmem [#allocation5], %s276_s25  ;;  %s284_s30 = sshll.u32 %s455_s9, 8 }
  0x3a   : > { %v155_v2 = vsub.f32 2.0, %v153_v0  ;;  %v156_v3 = vsub.f32 2.0, %v154_v1  ;;  %s184_s29 = sshll.u32 %s150_s27, 4  ;;  %s602_s3 = scalar_lea.hbm %s650_s1, %s284_s30  ;;  %s597_s29 = int_to_ptr.vmem [resolvable:$true] %s184_s29 }
  0x3b   : > { %s168_s4 = scalar_lea.sflag [#allocation4], %s588_s24  ;;  %s381_s5 = scalar_lea.vmem %s597_s29, 256 }
  0x3c   : > { %v157_v4 = vmul.f32 0.5, %v155_v2  ;;  %v158_v5 = vmul.f32 0.5, %v156_v3  ;;  %p382_p8 = scmp.ne.s32.totalorder %s597_s29, %s381_s5  ;;  %p659_p9 = scmp.ne.s32.totalorder %s654_s19, 0 }
  0x3d   : > { %s466_s9 = smov [#allocation5]  }
  0x3e   : > { %347 = vtanh.f32 %v157_v4  ;;  %p383_p11 = pnand %p382_p8, %p659_p9  ;;  %s385_s12 = sshll.u32 %s466_s9, 4  ;;  %s386_s12 = int_to_ptr.vmem [resolvable:$false] %s385_s12 }
  0x3f   : > { %349 = vtanh.f32 %v158_v5  ;;  %s387_s13 = scalar_lea.vmem %s386_s12, 512  ;;  %p388_p7 = scmp.lt.s32.totalorder %s597_s29, %s386_s12 }
  0x40   : > { %p384_p0 = pneg %p383_p11  ;;  %p389_p13 = scmp.lt.s32.totalorder %s387_s13, %s381_s5 }
  0x42   : > { %p390_p3 = por %p389_p13, %p388_p7 }
  0x44   : > { %p391_p6 = pnand %p390_p3, %p384_p0 }
  0x48   : > { %v348_v6 = vpop.eup %347 }
  0x49   : > { %v350_v7 = vpop.eup %349  ;;  %v161_v8 = vmul.f32 0.5, %v348_v6 }
  0x4a   : > { %v162_v9 = vmul.f32 0.5, %v350_v7 }
  0x4b   : > { %v163_v10 = vadd.f32 0.5, %v161_v8 }
  0x4c   : > { %v164_v11 = vadd.f32 0.5, %v162_v9 }
  0x4d   : > { %165 = vst [vmem:[%s150_s27] sm:$0xff] %v163_v10 }
  0x4e   : > { %166 = vst [vmem:[%s150_s27 + $0x8] sm:$0xff] %v164_v11 }
  0x4f   : > { %394 = shalt.err (!%p391_p6)
}
  0x50   : > { %s395_s15 = scalar_lea.hbm %s602_s3, 256  ;;  %s399_s22 = scalar_lea.hbm %s650_s1, 512 }
  0x51   : > { %p396_p4 = scmp.ne.s32.totalorder %s602_s3, %s395_s15  ;;  %p400_p1 = scmp.lt.u32.totalorder %s602_s3, %s650_s1 }
  0x52   : > { %p401_p2 = scmp.lt.u32.totalorder %s399_s22, %s395_s15  ;;  %p403_p8 = scmp.lt.u32.totalorder %s395_s15, %s602_s3 }
  0x53   : > { %p397_p10 = pnand %p396_p4, %p659_p9 }
  0x54   : > { %p402_p5 = por %p401_p2, %p400_p1 }
  0x55   : > { %p398_p12 = pneg %p397_p10 }
  0x56   : > { %p404_p11 = por %p403_p8, %p402_p5 }
  0x58   : > { %p405_p0 = pnand %p404_p11, %p398_p12 }
  0x5a   : > { %408 = shalt.err (!%p405_p0)
}
  0x5b   : > { %287 = dma.vmem_to_hbm [thread:$0]  (%p659_p9), %s597_s29, 256, %s602_s3, %s168_s4  }
  0x5c PF: > { %s196_s25 = sand.u32 1, %s443_s6   ;;  %p660_p7 = scmp.ne.s32.totalorder %s655_s21, 0 }
  0x5d   : > { %p661_p13 = scmp.ge.s32.totalorder %s463_s11, 2  ;;  %s197_s26 = scalar_lea.sflag [#allocation4], %s196_s25 }
  0x5f   : > { %p294_p3 = pnand %p661_p13, %p660_p7 }
  0x61   : > { %438 = dma.done.wait (!%p294_p3), %s197_s26, 256  }
  0x62   : > { %440 = vsyncadd (!%p294_p3), %s197_s26, 4294967040  ;;  %s17_s11 = sadd.s32 1, %s463_s11   ;;  %s662_s6 = smov %s447_s7 }
  0x63   : > { %p14_p6 = scmp.ge.s32.totalorder %s17_s11, 4   ;;  %s663_s7 = smov %s451_s8 }
  0x64   : > { %s664_s8 = smov %s533_s20  ;;  %s665_s9 = smov %s459_s10 }
  0x65   : > { %s666_s10 = smov %s668_s14  ;;  %16 = sbr.rel (!%p14_p6) target bundleno = 6 (0x6), region = 69 }
  0x6c   :  { %202 = vsyncpa [#allocation3], 1 }
  0x6d   :  { %204 = vsyncpa [#allocation3 + $0x1], 1 }
  0x6e   :  { %205 = vsyncpa [#allocation4], 1 }
  0x6f   :  { %207 = vsyncpa [#allocation4 + $0x1], 1 }

</bundles_post_ra>
